<compile_context>
chip_gen: v7x
topology: tpu7x:2x2x1
jax: 0.10.0
libtpu: 0.0.40
codegen_flags: <defaults>
</compile_context>

<pallas_src>
import functools

import jax
import jax.numpy as jnp
from jax.experimental import pallas as pl
from jax.experimental.pallas import tpu as pltpu


_MXU_MAX_F = 512  # below this, the XLU lane-reduce can bind -> use the MXU


def _round_up(x, m):
    return ((x + m - 1) // m) * m


def _vmem_capacity_bytes():
    try:
        cap = getattr(pltpu.get_tpu_info(), "vmem_capacity_bytes", None)
        if cap:
            return int(cap)
    except Exception:
        pass
    return 64 * 1024 * 1024  # conservative fallback (v7x-sized VMEM)


def _num_tensorcores():
    try:
        info = pltpu.get_tpu_info()
        for attr in ("num_cores", "core_count", "num_tensorcores", "tensorcore_count"):
            v = getattr(info, attr, None)
            if v:
                return int(v)
        vmem = getattr(info, "vmem_capacity_bytes", None)
        if vmem:
            # Heuristic: the 64 MiB-VMEM generation (v7x) has 2 TCs per chip.
            return 2 if int(vmem) <= 64 * 1024 * 1024 else 1
    except Exception:
        pass
    return 2  # assume 2 TCs: an extra grid tile is harmless on single-TC parts


def _pick_tiles(batch, num_features, vmem_cap):
    """Bytes-based x-block target: big enough to amortize the ~0.35 us/step grid
    overhead, small enough that the double-buffered pipeline (x + weight +
    output buffers) stays inside scoped VMEM on every generation
    (v7x: 64 MiB part / 32 MiB scoped; v5e/v6e: 128 MiB part)."""
    target = min(8 * 1024 * 1024, vmem_cap // 8)
    row_bytes = num_features * 4
    if 8 * row_bytes <= target:
        tf = num_features
        tb = max(8, (target // row_bytes) // 8 * 8)
    else:
        # Very large F: tile the feature (reduction) axis as well.  tb=32
        # amortizes the (sublane-padded) weight-block DMA against x traffic.
        tb = 32
        tf = max(128, (target // (2 * tb * 4)) // 128 * 128)
    return tb, tf


def _cap_rows(tb, batch, num_cores):
    """Keep the row tile a multiple of 8 that never exceeds the array, and
    guarantee >= num_cores batch tiles so the "parallel" axis feeds every TC."""
    if batch <= 8:
        return batch  # single block equal to the full (small) batch dim
    cap = max(8, (batch // 8) * 8)
    if num_cores > 1:
        per_core = _round_up(-(-batch // num_cores), 8)
        cap = min(cap, max(8, per_core))
    return max(8, min(tb, cap))


def _logreg_mxu_kernel(x_ref, w_ref, b_ref, o_ref):
    """Small-F path: (tb, F) x (F, 1) contraction on the MXU (frees VPU/XLU)."""
    z = jnp.dot(x_ref[...], w_ref[...],
                preferred_element_type=jnp.float32,
                precision=jax.lax.Precision.HIGHEST) + b_ref[0, 0]
    o_ref[...] = jax.nn.sigmoid(z).astype(o_ref.dtype)


def _logreg_reduce_kernel(x_ref, w_ref, b_ref, o_ref, acc_ref, *, valid_last_f):
    """Large-F path: VPU multiply + lane reduce, feature axis tiled over grid
    axis 1 ("arbitrary", innermost) with a (tb, 1) f32 accumulator."""
    k = pl.program_id(1)
    nk = pl.num_programs(1)

    @pl.when(k == 0)
    def _():
        acc_ref[...] = jnp.zeros_like(acc_ref)

    p = x_ref[...] * w_ref[...]                       # (tb, tf) f32 on the VPU
    if valid_last_f is not None:
        # Ragged last feature block: mask the products so stale (possibly NaN)
        # VMEM bits in the out-of-bounds region cannot reach the accumulator.
        tf = p.shape[-1]
        col = jax.lax.broadcasted_iota(jnp.int32, p.shape, 1)
        limit = jnp.where(k == nk - 1, valid_last_f, tf)
        p = jnp.where(col < limit, p, 0.0)
    acc_ref[...] += jnp.sum(p, axis=-1, keepdims=True)  # lane reduce on the XLU

    @pl.when(k == nk - 1)
    def _():
        z = acc_ref[...] + b_ref[0, 0]
        o_ref[...] = jax.nn.sigmoid(z).astype(o_ref.dtype)


def logistic_regression_forward(x, weight, bias, tile_rows=None, tile_features=None):
    """x: (B, F) f32, weight: (1, F) f32, bias: (1,) f32 -> (B, 1) f32."""
    B, F = x.shape
    x = x.astype(jnp.float32)
    weight = weight.astype(jnp.float32)
    b2d = bias.reshape(1, 1).astype(jnp.float32)

    vmem_cap = _vmem_capacity_bytes()
    auto_tb, auto_tf = _pick_tiles(B, F, vmem_cap)

    tb = _round_up(int(tile_rows), 8) if tile_rows is not None else auto_tb
    tb = _cap_rows(tb, B, _num_tensorcores())

    if tile_features is not None:
        tf = _round_up(int(tile_features), 128)
        tf = F if tf >= F else tf
    else:
        tf = min(auto_tf, F)

    num_b = -(-B // tb)
    cost = pl.CostEstimate(flops=2 * B * F, transcendentals=B,
                           bytes_accessed=B * F * 4 + B * 4 + F * 4)
    vmem_limit = int(min(vmem_cap // 2, 128 * 1024 * 1024))

    if tf >= F and F <= _MXU_MAX_F:
        # --- Small-F path: resident (F, 1) weight column, MXU contraction. ---
        w_col = weight.reshape(F, 1)
        return pl.pallas_call(
            _logreg_mxu_kernel,
            out_shape=jax.ShapeDtypeStruct((B, 1), jnp.float32),
            grid=(num_b,),
            in_specs=[
                pl.BlockSpec((tb, F), lambda i: (i, 0)),            # batch-tiled x
                pl.BlockSpec((F, 1), lambda i: (0, 0)),             # resident weight
                pl.BlockSpec(memory_space=pltpu.MemorySpace.SMEM),  # bias scalar
            ],
            out_specs=pl.BlockSpec((tb, 1), lambda i: (i, 0)),
            compiler_params=pltpu.CompilerParams(
                dimension_semantics=("parallel",),
                vmem_limit_bytes=vmem_limit,
            ),
            cost_estimate=cost,
        )(x, w_col, b2d)

    # --- Large-F path: lane-dense (1, tf) weight blocks, feature-axis grid. ---
    num_k = -(-F // tf)
    rem = F - (num_k - 1) * tf
    valid_last_f = rem if rem != tf else None
    kernel = functools.partial(_logreg_reduce_kernel, valid_last_f=valid_last_f)
    return pl.pallas_call(
        kernel,
        out_shape=jax.ShapeDtypeStruct((B, 1), jnp.float32),
        grid=(num_b, num_k),                                        # reduction last
        in_specs=[
            pl.BlockSpec((tb, tf), lambda i, k: (i, k)),            # x tile
            pl.BlockSpec((1, tf), lambda i, k: (0, k)),             # weight slab
            pl.BlockSpec(memory_space=pltpu.MemorySpace.SMEM),      # bias scalar
        ],
        out_specs=pl.BlockSpec((tb, 1), lambda i, k: (i, 0)),
        scratch_shapes=[pltpu.VMEM((tb, 1), jnp.float32)],
        compiler_params=pltpu.CompilerParams(
            dimension_semantics=("parallel", "arbitrary"),
            vmem_limit_bytes=vmem_limit,
        ),
        cost_estimate=cost,
    )(x, weight, b2d)


if __name__ == "__main__":
    key = jax.random.PRNGKey(0)
    k1, k2, k3, k4, k5, k6 = jax.random.split(key, 6)

    # Case 1: exactly the module spec — zero-initialized Linear (MXU path).
    batch, num_features = 8, 32
    x = jax.random.normal(k1, (batch, num_features), dtype=jnp.float32)
    weight = jnp.zeros((1, num_features), dtype=jnp.float32)
    bias = jnp.zeros((1,), dtype=jnp.float32)

    out = jax.block_until_ready(logistic_regression_forward(x, weight, bias))
    ref = jax.nn.sigmoid(
        jnp.dot(x, weight.T, precision=jax.lax.Precision.HIGHEST) + bias)
    assert out.shape == (batch, 1)
    assert jnp.allclose(out, ref, atol=1e-5), (out, ref)

    # Case 2: non-trivial params + ragged batch (13 % 8 != 0), handled by
    # Pallas's partial last block (no jnp.pad, no output slicing).
    batch2 = 13
    x2 = jax.random.normal(k2, (batch2, num_features), dtype=jnp.float32)
    w2 = jax.random.normal(k3, (1, num_features), dtype=jnp.float32) * 0.1
    b2 = jax.random.normal(k4, (1,), dtype=jnp.float32) * 0.1

    out2 = jax.block_until_ready(
        logistic_regression_forward(x2, w2, b2, tile_rows=8))
    ref2 = jax.nn.sigmoid(
        jnp.dot(x2, w2.T, precision=jax.lax.Precision.HIGHEST) + b2)
    assert out2.shape == (batch2, 1)
    assert jnp.allclose(out2, ref2, atol=1e-5), (out2, ref2)

    # Case 3: feature-tiled reduction path (accumulator + pl.when) with a
    # ragged last feature block (200 % 128 != 0) and a ragged batch tile.
    batch3, feat3 = 12, 200
    x3 = jax.random.normal(k5, (batch3, feat3), dtype=jnp.float32)
    w3 = jax.random.normal(k6, (1, feat3), dtype=jnp.float32) * 0.05
    b3 = jnp.array([0.3], dtype=jnp.float32)

    out3 = jax.block_until_ready(
        logistic_regression_forward(x3, w3, b3, tile_rows=8, tile_features=128))
    ref3 = jax.nn.sigmoid(
        jnp.dot(x3, w3.T, precision=jax.lax.Precision.HIGHEST) + b3)
    assert out3.shape == (batch3, 1)
    assert jnp.allclose(out3, ref3, atol=1e-5), (out3, ref3)

    print("KERNEL_OK")
</pallas_src>

<mosaic_0001>
module attributes {stable_mosaic.version = 11 : i64} {
  func.func @_logreg_mxu_kernel(%arg0: i32, %arg1: memref<8x32xf32, #tpu.memory_space<vmem>>, %arg2: memref<32x1xf32, #tpu.memory_space<vmem>>, %arg3: memref<1x1xf32, #tpu.memory_space<smem>>, %arg4: memref<8x1xf32, #tpu.memory_space<vmem>>) attributes {dimension_semantics = [#tpu.dimension_semantics<parallel>], iteration_bounds = array<i64: 1>, scalar_prefetch = 0 : i64, scratch_operands = 0 : i64, tpu.core_type = #tpu.core_type<tc>, window_params = [{transform_indices = @transform_0, window_bounds = array<i64: 8, 32>}, {pipeline_mode = #tpu.pipeline_mode<synchronous>, transform_indices = @transform_1, window_bounds = array<i64: 32, 1>}, {transform_indices = @transform_2, window_bounds = array<i64: 1, 1>}, {transform_indices = @transform_3, window_bounds = array<i64: 8, 1>}]} {
    %c0 = arith.constant 0 : index
    %c0_0 = arith.constant 0 : index
    %0 = vector.load %arg1[%c0, %c0_0] : memref<8x32xf32, #tpu.memory_space<vmem>>, vector<8x32xf32>
    %c0_1 = arith.constant 0 : index
    %c0_2 = arith.constant 0 : index
    %1 = vector.load %arg2[%c0_1, %c0_2] : memref<32x1xf32, #tpu.memory_space<vmem>>, vector<32x1xf32>
    %cst = arith.constant dense<0.000000e+00> : vector<8x1xf32>
    %2 = tpu.matmul %0, %1, %cst {dimension_numbers = #tpu.dot_dimension_numbers<[1], [0], [0], [1], [0, 0, 1, 1], [], []>, precision = #tpu.contract_precision<fp32>} : vector<8x32xf32>, vector<32x1xf32>, vector<8x1xf32> -> vector<8x1xf32>
    %c0_3 = arith.constant 0 : index
    %c0_4 = arith.constant 0 : index
    %3 = memref.load %arg3[%c0_3, %c0_4] : memref<1x1xf32, #tpu.memory_space<smem>>
    %4 = vector.broadcast %3 : f32 to vector<8x1xf32>
    %5 = arith.addf %2, %4 : vector<8x1xf32>
    %6 = arith.negf %5 : vector<8x1xf32>
    %7 = math.exp %6 : vector<8x1xf32>
    %cst_5 = arith.constant 1.000000e+00 : f32
    %8 = vector.broadcast %cst_5 : f32 to vector<8x1xf32>
    %9 = arith.addf %8, %7 : vector<8x1xf32>
    %10 = arith.divf %8, %9 : vector<8x1xf32>
    %c0_6 = arith.constant 0 : index
    %c0_7 = arith.constant 0 : index
    %11 = vector.load %arg4[%c0_6, %c0_7] : memref<8x1xf32, #tpu.memory_space<vmem>>, vector<8x1xf32>
    tpu.vector_store %arg4[%c0_6, %c0_7], %10 {strides = array<i32>} : memref<8x1xf32, #tpu.memory_space<vmem>>, vector<8x1xf32>,
    return
  }
  func.func @transform_0(%arg0: i32) -> (i32, i32) {
    %c0_i32 = arith.constant 0 : i32
    %c0_i32_0 = arith.constant 0 : i32
    return %arg0, %c0_i32 : i32, i32
  }
  func.func @transform_1(%arg0: i32) -> (i32, i32) {
    %c0_i32 = arith.constant 0 : i32
    %c0_i32_0 = arith.constant 0 : i32
    %c0_i32_1 = arith.constant 0 : i32
    return %c0_i32, %c0_i32_0 : i32, i32
  }
  func.func @transform_2(%arg0: i32) -> (i32, i32) {
    %c0_i32 = arith.constant 0 : i32
    %c0_i32_0 = arith.constant 0 : i32
    %c0_i32_1 = arith.constant 0 : i32
    return %c0_i32, %c0_i32_0 : i32, i32
  }
  func.func @transform_3(%arg0: i32) -> (i32, i32) {
    %c0_i32 = arith.constant 0 : i32
    %c0_i32_0 = arith.constant 0 : i32
    return %arg0, %c0_i32 : i32, i32
  }
}

</mosaic_0001>

<bundles_post_ra>
// kernel: tpu_custom_call.1
= control target key start
LH: loop header
LB: loop body
LE: loop exit
PB: predicated region body
PF: predicated region fallthrough
CT: control target
= control target key end

     0   :  { %vm22_vm0 = vcmask 261120   ;;  %v673_v0 = vmov 0.0|0.0   ;;  %vm674_vm1 = vmmov 0   ;;  %v675_v8 = vmov 0.0   ;;  %s736_s1 = inlined_call_operand.vmem [shape: f32[32,1], index: 1, kind: input, shape index: {}]   ;;  %s737_s0 = inlined_call_operand.vmem [shape: f32[8,32], index: 0, kind: input, shape index: {}]   ;;  %s738_s2 = inlined_call_operand.<no memory space> [shape: f32[1,1], index: 2, kind: input, shape index: {}]   ;;  %s739_s3 = inlined_call_operand.vmem [shape: f32[8,1], index: 3, kind: output, shape index: {}]  }
   0x1   :  { %620 = vmatprep.subr.bf16.mxu1 %v673_v0  ;;  %638 = vmatprep.subr.bf16.mxu0 %v673_v0  ;;  %v16_v1 = vld [vmem:[%s736_s1] sm:$0xff]  ;;  %v17_v2 = vld [vmem:[%s736_s1 + $0x8] sm:$0xff]  ;;  %v18_v3 = vld [vmem:[%s736_s1 + $0x10] sm:$0xff]  ;;  %v21_v41 = vstv %s738_s2  ;;  %vm517_vm2 = vcmask 7168  }
   0x2   :  { %v27_v4 = vand.u32 4294901760, %v16_v1  ;;  %v30_v5 = vand.u32 4294901760, %v17_v2  ;;  %v19_v6 = vld [vmem:[%s736_s1 + $0x18] sm:$0xff]  ;;  %v33_v7 = vand.u32 4294901760, %v18_v3  ;;  %562 = vmatprep.mubr.msk.f32.mxu1 %vm674_vm1, %v675_v8  ;;  %595 = vmatprep.mubr.msk.f32.mxu0 %vm674_vm1, %v675_v8  ;;  %v15_v9 = vld [vmem:[%s737_s0] sm:$0xff] }
   0x3   :  { %v36_v10 = vand.u32 4294901760, %v19_v6  ;;  %v24_v11 = vsel %vm22_vm0, %v15_v9, 0 }
   0x4   :  { %v621_v12 = vpack.c.bf16 %v30_v5, %v27_v4  ;;  %v107_v13 = vsub.f32 %v16_v1, %v27_v4  ;;  %v114_v14 = vsub.f32 %v17_v2, %v30_v5  ;;  %v121_v15 = vsub.f32 %v18_v3, %v33_v7 }
   0x5   :  { %v128_v16 = vsub.f32 %v19_v6, %v36_v10  ;;  %v95_v17 = vand.u32 4294901760, %v24_v11  ;;  %v624_v18 = vpack.c.bf16 %v36_v10, %v33_v7 }
   0x6   :  { %622 = vmatpush3.bf16.msra.mxu1 %v621_v12  ;;  %640 = vmatpush3.bf16.msra.mxu0 %v621_v12  ;;  %v108_v19 = vand.u32 4294901760, %v107_v13  ;;  %v115_v20 = vand.u32 4294901760, %v114_v14  ;;  %v122_v21 = vand.u32 4294901760, %v121_v15  ;;  %v633_v39 = vpack.c.bf16 %v114_v14, %v107_v13 }
   0x7   :  { %623 = vmatprep.subr.bf16.mxu1 %v673_v0  ;;  %641 = vmatprep.subr.bf16.mxu0 %v673_v0  ;;  %v96_v22 = vsub.f32 %v24_v11, %v95_v17  ;;  %v129_v23 = vand.u32 4294901760, %v128_v16  ;;  %v636_v40 = vpack.c.bf16 %v128_v16, %v121_v15 }
   0x8   :  { %v109_v24 = vsub.f32 %v107_v13, %v108_v19  ;;  %v116_v25 = vsub.f32 %v114_v14, %v115_v20  ;;  %v123_v26 = vsub.f32 %v121_v15, %v122_v21  ;;  %v645_v31 = vpack.c.bf16 %v115_v20, %v108_v19 }
   0x9   :  { %v97_v27 = vand.u32 4294901760, %v96_v22  ;;  %v130_v28 = vsub.f32 %v128_v16, %v129_v23  ;;  %v648_v37 = vpack.c.bf16 %v129_v23, %v122_v21 }
   0xa   :  { %625 = vmatpush3.bf16.msra.mxu1 %v624_v18  ;;  %643 = vmatpush3.bf16.msra.mxu0 %v624_v18  ;;  %v110_v29 = vand.u32 4294901760, %v109_v24  ;;  %v117_v30 = vand.u32 4294901760, %v116_v25  ;;  %v124_v34 = vand.u32 4294901760, %v123_v26 }
   0xb   :  { %v98_v32 = vsub.f32 %v96_v22, %v97_v27  ;;  %626 = vmatprep.subr.bf16.mxu1 %v673_v0  ;;  %644 = vmatprep.subr.bf16.mxu0 %v673_v0  ;;  %v131_v35 = vand.u32 4294901760, %v130_v28 }
   0xc   :  { %v627_v33 = vpack.c.bf16 %v117_v30, %v110_v29 }
   0xd   :  { %v99_v36 = vand.u32 4294901760, %v98_v32  ;;  %596 = vmatmul.mubr.f32.vlgmr.msra.gmra.mrb[0].mxu0 %v97_v27  ;;  %v630_v38 = vpack.c.bf16 %v131_v35, %v124_v34 }
   0xe   :  { %646 = vmatpush3.bf16.msra.mxu0 %v645_v31  ;;  %606 = vmatprep.mubr.msk.f32.mxu0 %vm674_vm1, %v675_v8 }
   0xf   :  { %563 = vmatmul.mubr.f32.vlgmr.msra.gmra.mrb[0].mxu1 %v99_v36  ;;  %647 = vmatprep.subr.bf16.mxu0 %v673_v0 }
  0x10   :  { %628 = vmatpush3.bf16.msra.mxu1 %v627_v33  ;;  %573 = vmatprep.mubr.msk.f32.mxu1 %vm674_vm1, %v675_v8 }
  0x11   :  { %629 = vmatprep.subr.bf16.mxu1 %v673_v0 }
  0x12   :  { %649 = vmatpush3.bf16.msra.mxu0 %v648_v37 }
  0x13   :  { %650 = vmatprep.subr.bf16.mxu0 %v673_v0 }
  0x14   :  { %631 = vmatpush3.bf16.msra.mxu1 %v630_v38 }
  0x15   :  { %632 = vmatprep.subr.bf16.mxu1 %v673_v0  ;;  %607 = vmatmul.mubr.f32.vlgmr.msra.gmra.mrb[0].mxu0 %v95_v17 }
  0x16   :  { %652 = vmatpush3.bf16.msra.mxu0 %v621_v12  ;;  %617 = vmatprep.mubr.msk.f32.mxu0 %vm674_vm1, %v675_v8 }
  0x17   :  { %574 = vmatmul.mubr.f32.vlgmr.msra.gmra.mrb[0].mxu1 %v95_v17  ;;  %653 = vmatprep.subr.bf16.mxu0 %v673_v0 }
  0x18   :  { %634 = vmatpush3.bf16.msra.mxu1 %v633_v39  ;;  %584 = vmatprep.mubr.msk.f32.mxu1 %vm674_vm1, %v675_v8 }
  0x19   :  { %635 = vmatprep.subr.bf16.mxu1 %v673_v0 }
  0x1a   :  { %655 = vmatpush3.bf16.msra.mxu0 %v624_v18 }
  0x1c   :  { %637 = vmatpush3.bf16.msra.mxu1 %v636_v40 }
  0x1d   :  { %618 = vmatmul.mubr.f32.vlgmr.msra.gmra.mrb[0].mxu0 %v95_v17 }
  0x1f   :  { %585 = vmatmul.mubr.f32.vlgmr.msra.gmra.mrb[0].mxu1 %v96_v22 }
  0xf0   :  { %v507_v42 = vpop.f32.mrb[0].mxu0 }
  0xf1   :  { %v619_v43 = vpop.f32.mrb[1].mxu0 }
  0xf2   :  { %v272_v44 = vpop.f32.mrb[0].mxu1 }
  0xf3   :  { %v656_v45 = vadd.f32 %v272_v44, %v21_v41  ;;  %v586_v46 = vpop.f32.mrb[1].mxu1 }
  0xf5   :  { %v657_v47 = vadd.f32 %v656_v45, %v507_v42 }
  0xf7   :  { %v523_v48 = vmul.f32 -1.442695, %v657_v47 }
  0xf9   :  { %669 = vpow2.f32 %v523_v48 }
 0x103   :  { %v670_v49 = vpop.eup %669 }
 0x104   :  { %v514_v50 = vadd.f32 1.0, %v670_v49 }
 0x106   :  { %671 = vrcp.f32 %v514_v50 }
 0x110   :  { %v672_v51 = vpop.eup %671 }
 0x111   :  { %518 = vst.msk [vmem:[%s739_s3] sm:$0xff] %vm517_vm2, %v672_v51 }

</bundles_post_ra>
